<compile_context>
chip_gen: v7x
topology: tpu7x:2x2x1
jax: 0.10.0
libtpu: 0.0.40
codegen_flags: <defaults>
</compile_context>

<pallas_src>
import functools

import numpy as np
import jax
import jax.numpy as jnp
from jax import lax
from jax.experimental import pallas as pl
from jax.experimental.pallas import tpu as pltpu


def _round_up(v, m):
    return ((v + m - 1) // m) * m


def _delta_kernel(x_ref, halo_ref, o_ref, buf_ref, *,
                  order, N, inv_denom, T, tile_t, P, nb):
    """One time-tile: writes [x | delta^1 | ... | delta^order] for this tile's rows."""
    D = x_ref.shape[-1]
    E = tile_t + 2 * P
    i = pl.program_id(0)
    f32 = jnp.float32
    out_dtype = o_ref.dtype

    # ---- assemble (left halo | center | right halo) in an f32 scratch --------------
    # P and tile_t are multiples of the sublane packing, so all three stores are
    # aligned contiguous copies (no sublane relayout).
    xv = x_ref[...]
    buf_ref[0:P, :] = halo_ref[0:P, :].astype(f32)
    buf_ref[P:P + tile_t, :] = xv.astype(f32)
    buf_ref[P + tile_t:, :] = halo_ref[P:2 * P, :].astype(f32)

    # Only the last two tiles can see rows past the true end of the sequence
    # (tile_t >= P >= N*order guarantees nothing further left/right matters).
    right_tiles = tuple(range(max(nb - 2, 0), nb))

    def emit_right_patch(hi):
        # Rows of buf_ref[:hi] whose global index is >= T must replicate the row at
        # global T-1 (torchaudio "replicate" padding, re-applied per order).  The row
        # ranges are static per boundary tile, so each patch is a tiny pl.when block.
        for t_idx in right_tiles:
            p_t = T - (t_idx * tile_t - P)       # first scratch row with global >= T
            if p_t < hi:                         # static: emit only if non-empty
                @pl.when(i == t_idx)
                def _():
                    rep = jnp.broadcast_to(buf_ref[p_t - 1:p_t, :], (hi - p_t, D))
                    buf_ref[p_t:hi, :] = rep

    def emit_left_patch(lo):
        # Rows buf_ref[lo:P) have global index < 0 and replicate global row 0 (= row P).
        if lo < P:                               # static
            @pl.when(i == 0)
            def _():
                rep = jnp.broadcast_to(buf_ref[P:P + 1, :], (P - lo, D))
                buf_ref[lo:P, :] = rep

    # Order-0 fix-up: covers the garbage tail of a partial last block; the halos
    # themselves already carry replicated boundary rows built on the host.
    emit_right_patch(E)

    feats = [xv]                                 # pass-through features (input dtype)

    for o in range(1, order + 1):
        lo = o * N                               # this order's result: scratch rows [lo, hi)
        hi = E - o * N
        # antisymmetric taps: delta = inv_denom * sum_{n=1..N} n * (c[+n] - c[-n])
        acc = buf_ref[lo + 1:hi + 1, :] - buf_ref[lo - 1:hi - 1, :]
        for n in range(2, N + 1):
            acc = acc + f32(n) * (buf_ref[lo + n:hi + n, :] -
                                  buf_ref[lo - n:hi - n, :])
        d = acc * f32(inv_denom)
        if jnp.dtype(out_dtype) != jnp.dtype(f32):
            # the reference casts every order back to the input dtype before reuse
            d = d.astype(out_dtype).astype(f32)

        h_out = P - o * N                        # halo width of this order's result
        feats.append(d[h_out:h_out + tile_t, :].astype(out_dtype))

        if o < order:
            buf_ref[lo:hi, :] = d                # becomes the next order's input
            emit_left_patch(lo)                  # boundary tiles only (pl.when-gated)
            emit_right_patch(hi)

    # single lane-dense, full-width store per tile
    o_ref[...] = jnp.concatenate(feats, axis=-1)


def _choose_tile_t(T, D, order, itemsize, pack, P):
    d_out = D * (order + 1)
    # per-row VMEM: double-buffered in/out blocks + f32 scratch + conv temporaries
    per_row = 2 * (D + d_out) * itemsize + 4 * D * (4 + 2 * order)
    budget = 12 * 1024 * 1024
    t = budget // max(per_row, 1)
    t = max(t, 2 * P, pack)
    # keep several grid steps alive (megacore sharding on v7x + DMA/compute overlap)
    min_tile = max(64 * pack, 2 * P)             # ~512 f32 rows: past the roofline knee
    if T >= 2 * min_tile and t > min_tile:
        t = min(t, max(_round_up(pl.cdiv(T, 8), pack), min_tile))
    t = min(t, 16384)
    t = max((t // pack) * pack, pack)
    return int(t)


def _build_halos(x, T, D, tile_t, nb, P):
    """(nb, 2P, D): rows [i*tile_t - P, i*tile_t) and [(i+1)*tile_t, (i+1)*tile_t + P),
    with out-of-range rows replicated from the boundary rows.  Built from static
    slices / broadcasts only (no gather HLO)."""
    first = jnp.broadcast_to(x[:1, :], (P, D))
    last = jnp.broadcast_to(x[T - 1:T, :], (P, D))
    if nb == 1:
        return jnp.concatenate([first, last], axis=0)[None]
    pad_len = nb * tile_t + P - T                # >= P > 0
    xp = jnp.concatenate([x, jnp.broadcast_to(x[T - 1:T, :], (pad_len, D))], axis=0)
    blocks = xp[:nb * tile_t, :].reshape(nb, tile_t, D)
    lefts = jnp.concatenate([first[None], blocks[:-1, tile_t - P:, :]], axis=0)
    rights = jnp.concatenate(
        [blocks[1:, :P, :], xp[nb * tile_t:nb * tile_t + P, :][None]], axis=0)
    return jnp.concatenate([lefts, rights], axis=1)  # (nb, 2P, D)


def delta_features(x, order=1, win_length=5, tile_t=None):
    """Pallas implementation of the Delta module forward pass.

    Args:
      x: [T, D] array.
    Returns:
      [T, D * (order + 1)] array: input concatenated with its deltas.
    """
    assert x.ndim == 2
    assert order >= 1
    assert win_length >= 3 and win_length % 2 == 1
    T, D = x.shape
    N = (win_length - 1) // 2
    denom = N * (N + 1) * (2 * N + 1) / 3.0
    inv_denom = 1.0 / denom
    H = N * order                                # receptive-field halo (rows per side)
    d_out = D * (order + 1)
    itemsize = jnp.dtype(x.dtype).itemsize
    pack = max(8, 32 // max(itemsize, 1))        # sublane packing: f32->8, bf16->16
    P = _round_up(H, pack)                       # sublane-aligned halo width per side

    if tile_t is None:
        tile_t = _choose_tile_t(T, D, order, itemsize, pack, P)
    tile_t = int(tile_t)
    if tile_t % pack:
        tile_t = _round_up(tile_t, pack)
    if tile_t >= T:
        tile_t = _round_up(T, pack)              # single (possibly padded) tile
    tile_t = max(tile_t, P)                      # interior tiles must cover the halo
    nb = pl.cdiv(T, tile_t)
    E = tile_t + 2 * P

    halos = _build_halos(x, T, D, tile_t, nb, P)

    kernel = functools.partial(
        _delta_kernel, order=order, N=N, inv_denom=inv_denom,
        T=T, tile_t=tile_t, P=P, nb=nb)

    # VMEM limit derived from the actual footprint, capped v7x-safe (<= 32 MiB).
    in_block = tile_t * D * itemsize
    halo_block = 2 * P * D * itemsize
    out_block = tile_t * d_out * itemsize
    scratch_bytes = E * D * 4
    work_bytes = (2 * N + 4) * E * D * 4
    needed = 2 * (in_block + halo_block + out_block) + scratch_bytes + work_bytes \
        + (2 << 20)
    vmem_limit = int(min(max(needed, 16 * 1024 * 1024), 32 * 1024 * 1024))

    flops = int(3 * N * order * T * D)
    bytes_accessed = int((T * D + T * d_out + nb * 2 * P * D) * itemsize)

    return pl.pallas_call(
        kernel,
        out_shape=jax.ShapeDtypeStruct((T, d_out), x.dtype),
        grid=(nb,),
        in_specs=[
            pl.BlockSpec((tile_t, D), lambda i: (i, 0)),
            pl.BlockSpec((pl.Squeezed(), 2 * P, D), lambda i: (i, 0, 0)),
        ],
        out_specs=pl.BlockSpec((tile_t, d_out), lambda i: (i, 0)),
        scratch_shapes=[pltpu.VMEM((E, D), jnp.float32)],
        compiler_params=pltpu.CompilerParams(
            dimension_semantics=("parallel",),
            vmem_limit_bytes=vmem_limit,
        ),
        cost_estimate=pl.CostEstimate(
            flops=flops, transcendentals=0, bytes_accessed=bytes_accessed),
    )(x, halos)


def _delta_reference(x, order=1, win_length=5):
    """Pure-JAX reference mirroring torchaudio.transforms.ComputeDeltas."""
    N = (win_length - 1) // 2
    denom = N * (N + 1) * (2 * N + 1) / 3.0
    coeffs = np.arange(-N, N + 1, dtype=np.float32) / denom

    feats = [x]
    for _ in range(order):
        c = feats[-1]  # [T, D]
        padded = jnp.concatenate(
            [jnp.repeat(c[:1], N, axis=0), c, jnp.repeat(c[-1:], N, axis=0)], axis=0)
        T = c.shape[0]
        d = sum(coeffs[k] * padded[k:k + T] for k in range(2 * N + 1))
        feats.append(d.astype(x.dtype))
    return jnp.concatenate(feats, axis=-1)


if __name__ == "__main__":
    key = jax.random.PRNGKey(0)
    k1, k2, k3, k4 = jax.random.split(key, 4)

    def check(x, order, win_length, tile_t, name):
        out = jax.block_until_ready(
            delta_features(x, order=order, win_length=win_length, tile_t=tile_t))
        ref = _delta_reference(x, order=order, win_length=win_length)
        assert out.shape == ref.shape, (name, out.shape, ref.shape)
        np.testing.assert_allclose(np.asarray(out), np.asarray(ref),
                                   rtol=1e-5, atol=1e-5, err_msg=name)

    # 1) single-tile path (typical small [feat_seqlen, feat_dim] input).
    check(jax.random.normal(k1, (16, 8), jnp.float32), 2, 5, None, "single-tile")
    # 2) multi-tile path: aligned halos, partial last block, gated boundary patches.
    check(jax.random.normal(k2, (100, 8), jnp.float32), 2, 5, 40, "multi-tile")
    # 3) multi-tile where the second-to-last tile also crosses the sequence end.
    check(jax.random.normal(k3, (82, 8), jnp.float32), 2, 5, 40, "short-tail")
    # 4) module default order=1, win_length=3, auto tile (padded single block).
    check(jax.random.normal(k4, (50, 8), jnp.float32), 1, 3, None, "order-1")

    print("KERNEL_OK")
</pallas_src>

<mosaic_0001>
module attributes {stable_mosaic.version = 11 : i64} {
  func.func @_delta_kernel(%arg0: i32, %arg1: memref<16x8xf32, #tpu.memory_space<vmem>>, %arg2: memref<1x16x8xf32, #tpu.memory_space<vmem>>, %arg3: memref<16x24xf32, #tpu.memory_space<vmem>>, %arg4: memref<32x8xf32, #tpu.memory_space<vmem>>) attributes {dimension_semantics = [#tpu.dimension_semantics<parallel>], iteration_bounds = array<i64: 1>, scalar_prefetch = 0 : i64, scratch_operands = 1 : i64, tpu.core_type = #tpu.core_type<tc>, window_params = [{transform_indices = @transform_0, window_bounds = array<i64: 16, 8>}, {transform_indices = @transform_1, window_bounds = array<i64: 1, 16, 8>}, {transform_indices = @transform_2, window_bounds = array<i64: 16, 24>}]} {
    %c0 = arith.constant 0 : index
    %c0_0 = arith.constant 0 : index
    %0 = vector.load %arg1[%c0, %c0_0] : memref<16x8xf32, #tpu.memory_space<vmem>>, vector<16x8xf32>
    %c0_1 = arith.constant 0 : index
    %c0_2 = arith.constant 0 : index
    %c0_3 = arith.constant 0 : index
    %1 = vector.load %arg2[%c0_1, %c0_2, %c0_3] : memref<1x16x8xf32, #tpu.memory_space<vmem>>, vector<1x8x8xf32>
    %2 = vector.shape_cast %1 : vector<1x8x8xf32> to vector<8x8xf32>
    %c0_4 = arith.constant 0 : index
    %c0_5 = arith.constant 0 : index
    %3 = vector.load %arg4[%c0_4, %c0_5] : memref<32x8xf32, #tpu.memory_space<vmem>>, vector<8x8xf32>
    tpu.vector_store %arg4[%c0_4, %c0_5], %2 {strides = array<i32>} : memref<32x8xf32, #tpu.memory_space<vmem>>, vector<8x8xf32>,
    %c8 = arith.constant 8 : index
    %c0_6 = arith.constant 0 : index
    %4 = vector.load %arg4[%c8, %c0_6] : memref<32x8xf32, #tpu.memory_space<vmem>>, vector<16x8xf32>
    tpu.vector_store %arg4[%c8, %c0_6], %0 {strides = array<i32>} : memref<32x8xf32, #tpu.memory_space<vmem>>, vector<16x8xf32>,
    %c0_7 = arith.constant 0 : index
    %c8_8 = arith.constant 8 : index
    %c0_9 = arith.constant 0 : index
    %5 = vector.load %arg2[%c0_7, %c8_8, %c0_9] : memref<1x16x8xf32, #tpu.memory_space<vmem>>, vector<1x8x8xf32>
    %6 = vector.shape_cast %5 : vector<1x8x8xf32> to vector<8x8xf32>
    %c24 = arith.constant 24 : index
    %c0_10 = arith.constant 0 : index
    %7 = vector.load %arg4[%c24, %c0_10] : memref<32x8xf32, #tpu.memory_space<vmem>>, vector<8x8xf32>
    tpu.vector_store %arg4[%c24, %c0_10], %6 {strides = array<i32>} : memref<32x8xf32, #tpu.memory_space<vmem>>, vector<8x8xf32>,
    %c0_i32 = arith.constant 0 : i32
    %8 = arith.cmpi eq, %arg0, %c0_i32 : i32
    %9 = arith.extui %8 : i1 to i32
    %c0_i32_11 = arith.constant 0 : i32
    %10 = arith.cmpi ne, %9, %c0_i32_11 : i32
    scf.if %10 {
      %c23 = arith.constant 23 : index
      %c0_33 = arith.constant 0 : index
      %44 = vector.load %arg4[%c23, %c0_33] : memref<32x8xf32, #tpu.memory_space<vmem>>, vector<1x8xf32>
      %45 = vector.shape_cast %44 : vector<1x8xf32> to vector<1x8xf32>
      %46 = vector.broadcast %45 : vector<1x8xf32> to vector<8x8xf32>
      %c24_34 = arith.constant 24 : index
      %c0_35 = arith.constant 0 : index
      %47 = vector.load %arg4[%c24_34, %c0_35] : memref<32x8xf32, #tpu.memory_space<vmem>>, vector<8x8xf32>
      tpu.vector_store %arg4[%c24_34, %c0_35], %46 {strides = array<i32>} : memref<32x8xf32, #tpu.memory_space<vmem>>, vector<8x8xf32>,
    } else {
    }
    %c3 = arith.constant 3 : index
    %c0_12 = arith.constant 0 : index
    %11 = vector.load %arg4[%c3, %c0_12] : memref<32x8xf32, #tpu.memory_space<vmem>>, vector<28x8xf32>
    %c1 = arith.constant 1 : index
    %c0_13 = arith.constant 0 : index
    %12 = vector.load %arg4[%c1, %c0_13] : memref<32x8xf32, #tpu.memory_space<vmem>>, vector<28x8xf32>
    %13 = arith.subf %11, %12 : vector<28x8xf32>
    %c4 = arith.constant 4 : index
    %c0_14 = arith.constant 0 : index
    %14 = vector.load %arg4[%c4, %c0_14] : memref<32x8xf32, #tpu.memory_space<vmem>>, vector<28x8xf32>
    %c0_15 = arith.constant 0 : index
    %c0_16 = arith.constant 0 : index
    %15 = vector.load %arg4[%c0_15, %c0_16] : memref<32x8xf32, #tpu.memory_space<vmem>>, vector<28x8xf32>
    %16 = arith.subf %14, %15 : vector<28x8xf32>
    %cst = arith.constant 2.000000e+00 : f32
    %17 = vector.broadcast %cst : f32 to vector<28x8xf32>
    %18 = arith.mulf %17, %16 : vector<28x8xf32>
    %19 = arith.addf %13, %18 : vector<28x8xf32>
    %cst_17 = arith.constant 1.000000e-01 : f32
    %20 = vector.broadcast %cst_17 : f32 to vector<28x8xf32>
    %21 = arith.mulf %19, %20 : vector<28x8xf32>
    %22 = vector.extract_strided_slice %21 {offsets = [6, 0], sizes = [16, 8], strides = [1, 1]} : vector<28x8xf32> to vector<16x8xf32>
    %c2 = arith.constant 2 : index
    %c0_18 = arith.constant 0 : index
    %23 = vector.load %arg4[%c2, %c0_18] : memref<32x8xf32, #tpu.memory_space<vmem>>, vector<28x8xf32>
    tpu.vector_store %arg4[%c2, %c0_18], %21 {strides = array<i32>} : memref<32x8xf32, #tpu.memory_space<vmem>>, vector<28x8xf32>,
    %c0_i32_19 = arith.constant 0 : i32
    %24 = arith.cmpi eq, %arg0, %c0_i32_19 : i32
    %25 = arith.extui %24 : i1 to i32
    %c0_i32_20 = arith.constant 0 : i32
    %26 = arith.cmpi ne, %25, %c0_i32_20 : i32
    scf.if %26 {
      %c8_33 = arith.constant 8 : index
      %c0_34 = arith.constant 0 : index
      %44 = vector.load %arg4[%c8_33, %c0_34] : memref<32x8xf32, #tpu.memory_space<vmem>>, vector<1x8xf32>
      %45 = vector.shape_cast %44 : vector<1x8xf32> to vector<1x8xf32>
      %46 = vector.broadcast %45 : vector<1x8xf32> to vector<6x8xf32>
      %c2_35 = arith.constant 2 : index
      %c0_36 = arith.constant 0 : index
      %47 = vector.load %arg4[%c2_35, %c0_36] : memref<32x8xf32, #tpu.memory_space<vmem>>, vector<6x8xf32>
      tpu.vector_store %arg4[%c2_35, %c0_36], %46 {strides = array<i32>} : memref<32x8xf32, #tpu.memory_space<vmem>>, vector<6x8xf32>,
    } else {
    }
    %c0_i32_21 = arith.constant 0 : i32
    %27 = arith.cmpi eq, %arg0, %c0_i32_21 : i32
    %28 = arith.extui %27 : i1 to i32
    %c0_i32_22 = arith.constant 0 : i32
    %29 = arith.cmpi ne, %28, %c0_i32_22 : i32
    scf.if %29 {
      %c23 = arith.constant 23 : index
      %c0_33 = arith.constant 0 : index
      %44 = vector.load %arg4[%c23, %c0_33] : memref<32x8xf32, #tpu.memory_space<vmem>>, vector<1x8xf32>
      %45 = vector.shape_cast %44 : vector<1x8xf32> to vector<1x8xf32>
      %46 = vector.broadcast %45 : vector<1x8xf32> to vector<6x8xf32>
      %c24_34 = arith.constant 24 : index
      %c0_35 = arith.constant 0 : index
      %47 = vector.load %arg4[%c24_34, %c0_35] : memref<32x8xf32, #tpu.memory_space<vmem>>, vector<6x8xf32>
      tpu.vector_store %arg4[%c24_34, %c0_35], %46 {strides = array<i32>} : memref<32x8xf32, #tpu.memory_space<vmem>>, vector<6x8xf32>,
    } else {
    }
    %c5 = arith.constant 5 : index
    %c0_23 = arith.constant 0 : index
    %30 = vector.load %arg4[%c5, %c0_23] : memref<32x8xf32, #tpu.memory_space<vmem>>, vector<24x8xf32>
    %c3_24 = arith.constant 3 : index
    %c0_25 = arith.constant 0 : index
    %31 = vector.load %arg4[%c3_24, %c0_25] : memref<32x8xf32, #tpu.memory_space<vmem>>, vector<24x8xf32>
    %32 = arith.subf %30, %31 : vector<24x8xf32>
    %c6 = arith.constant 6 : index
    %c0_26 = arith.constant 0 : index
    %33 = vector.load %arg4[%c6, %c0_26] : memref<32x8xf32, #tpu.memory_space<vmem>>, vector<24x8xf32>
    %c2_27 = arith.constant 2 : index
    %c0_28 = arith.constant 0 : index
    %34 = vector.load %arg4[%c2_27, %c0_28] : memref<32x8xf32, #tpu.memory_space<vmem>>, vector<24x8xf32>
    %35 = arith.subf %33, %34 : vector<24x8xf32>
    %cst_29 = arith.constant 2.000000e+00 : f32
    %36 = vector.broadcast %cst_29 : f32 to vector<24x8xf32>
    %37 = arith.mulf %36, %35 : vector<24x8xf32>
    %38 = arith.addf %32, %37 : vector<24x8xf32>
    %cst_30 = arith.constant 1.000000e-01 : f32
    %39 = vector.broadcast %cst_30 : f32 to vector<24x8xf32>
    %40 = arith.mulf %38, %39 : vector<24x8xf32>
    %41 = vector.extract_strided_slice %40 {offsets = [4, 0], sizes = [16, 8], strides = [1, 1]} : vector<24x8xf32> to vector<16x8xf32>
    %42 = tpu.concatenate %0, %22, %41 in 1 : vector<16x8xf32>, vector<16x8xf32>, vector<16x8xf32> -> vector<16x24xf32>
    %c0_31 = arith.constant 0 : index
    %c0_32 = arith.constant 0 : index
    %43 = vector.load %arg3[%c0_31, %c0_32] : memref<16x24xf32, #tpu.memory_space<vmem>>, vector<16x24xf32>
    tpu.vector_store %arg3[%c0_31, %c0_32], %42 {strides = array<i32>} : memref<16x24xf32, #tpu.memory_space<vmem>>, vector<16x24xf32>,
    return
  }
  func.func @transform_0(%arg0: i32) -> (i32, i32) {
    %c0_i32 = arith.constant 0 : i32
    %c0_i32_0 = arith.constant 0 : i32
    return %arg0, %c0_i32 : i32, i32
  }
  func.func @transform_1(%arg0: i32) -> (i32, i32, i32) {
    %c0_i32 = arith.constant 0 : i32
    %c0_i32_0 = arith.constant 0 : i32
    %c0_i32_1 = arith.constant 0 : i32
    return %arg0, %c0_i32, %c0_i32_0 : i32, i32, i32
  }
  func.func @transform_2(%arg0: i32) -> (i32, i32) {
    %c0_i32 = arith.constant 0 : i32
    %c0_i32_0 = arith.constant 0 : i32
    return %arg0, %c0_i32 : i32, i32
  }
}

</mosaic_0001>

<bundles_post_ra>
// kernel: tpu_custom_call.1
= control target key start
LH: loop header
LB: loop body
LE: loop exit
PB: predicated region body
PF: predicated region fallthrough
CT: control target
= control target key end

     0   :  { %vm15_vm0 = vcmask 64512   ;;  %s268_s0 = inlined_call_operand.vmem [shape: f32[16,8], index: 0, kind: input, shape index: {}]   ;;  %s269_s1 = inlined_call_operand.vmem [shape: f32[1,16,8], index: 1, kind: input, shape index: {}]   ;;  %s270_s2 = inlined_call_operand.hbm [shape: f32[16,24], index: 2, kind: output, shape index: {}]  }
   0x1   :  { %v222_v0 = vld [vmem:[%s268_s0] sm:$0xff]  ;;  %v227_v1 = vld [vmem:[%s268_s0 + $0x8] sm:$0xff] }
   0x2   :  { %v14_v2 = vld [vmem:[%s269_s1] sm:$0xff]  ;;  %17 = vst.msk [vmem:[#allocation2 + $0x8] sm:$0xff] %vm15_vm0, %v222_v0  ;;  %18 = vst.msk [vmem:[#allocation2 + $0x10] sm:$0xff] %vm15_vm0, %v227_v1  ;;  %v19_v3 = vld [vmem:[%s269_s1 + $0x8] sm:$0xff] }
   0x3   :  { %16 = vst.msk [vmem:[#allocation2] sm:$0xff] %vm15_vm0, %v14_v2  ;;  %20 = vst.msk [vmem:[#allocation2 + $0x18] sm:$0xff] %vm15_vm0, %v19_v3 }
   0x4   :  { %7 = vsyncpa [#allocation4], 0  ;;  %vm118_vm1 = vcmask 1041408   ;;  %s200_s0 = smov 8   ;;  %vm80_vm2 = vcmask 62464   ;;  %vm70_vm3 = vcmask 60416  }
   0x5   :  { %vm133_vm4 = vcmask 1043456   ;;  %s201_s1 = smov 16   ;;  %vm147_vm5 = vcmask 130048   ;;  %vm150_vm6 = vcmask 195584   ;;  %s202_s17 = smov [#allocation3]  }
   0x6   :  { %s158_s18 = sshll.u32 %s202_s17, 4  ;;  %s159_s18 = int_to_ptr.vmem [resolvable:$true] %s158_s18 }
   0x7   :  { %s176_s19 = scalar_lea.vmem %s159_s18, 256  ;;  %p181_p1 = scmp.lt.s32.totalorder %s159_s18, %s159_s18 }
   0x8   :  { %p177_p0 = scmp.ne.s32.totalorder %s159_s18, %s176_s19  ;;  %p182_p2 = scmp.lt.s32.totalorder %s176_s19, %s176_s19 }
   0x9   :  { %v169_v4 = vld [vmem:[#allocation2 + $0x17] ss:$0 sm:$0xff]  ;;  %v32_v6 = vld [vmem:[#allocation2 + $0xb] sm:$0xff] }
   0xa   :  { %v31_v5 = vld [vmem:[#allocation2 + $0x3] sm:$0xff]  ;;  %30 = vst.msk [vmem:[#allocation2 + $0x18] sm:$0xff] %vm15_vm0, %v169_v4  ;;  %v44_v10 = vld [vmem:[#allocation2 + $0xc] sm:$0xff]  ;;  %p183_p3 = por %p182_p2, %p181_p1 }
   0xb   :  { %v35_v7 = vld [vmem:[#allocation2 + $0x1] sm:$0xff]  ;;  %v36_v8 = vld [vmem:[#allocation2 + $0x9] sm:$0xff] }
   0xc   :  { %v43_v9 = vld [vmem:[#allocation2 + $0x4] sm:$0xff]  ;;  %v39_v13 = vsub.f32 %v31_v5, %v35_v7  ;;  %v40_v14 = vsub.f32 %v32_v6, %v36_v8  ;;  %v49_v19 = vld [vmem:[#allocation2 + $0x10] sm:$0xff]  ;;  %p184_p4 = pnand %p183_p3, %p177_p0 }
   0xd   :  { %v47_v11 = vld [vmem:[#allocation2] sm:$0xff]  ;;  %v48_v12 = vld [vmem:[#allocation2 + $0x8] sm:$0xff] }
   0xe   :  { %v51_v15 = vsub.f32 %v43_v9, %v47_v11  ;;  %v52_v16 = vsub.f32 %v44_v10, %v48_v12 }
  0x10   :  { %v55_v17 = vmul.f32 2.0, %v51_v15  ;;  %v56_v18 = vmul.f32 2.0, %v52_v16 }
  0x11   :  { %v33_v22 = vld [vmem:[#allocation2 + $0x13] sm:$0xff]  ;;  %v34_v31 = vld [vmem:[#allocation2 + $0x1b] sm:$0xf] }
  0x12   :  { %v59_v20 = vadd.f32 %v55_v17, %v39_v13  ;;  %v60_v21 = vadd.f32 %v56_v18, %v40_v14  ;;  %v37_v23 = vld [vmem:[#allocation2 + $0x11] sm:$0xff]  ;;  %v38_v29 = vld [vmem:[#allocation2 + $0x19] sm:$0xf] }
  0x13   :  { %v45_v24 = vld [vmem:[#allocation2 + $0x14] sm:$0xff]  ;;  %v41_v25 = vsub.f32 %v33_v22, %v37_v23  ;;  %v46_v32 = vld [vmem:[#allocation2 + $0x1c] sm:$0xf]  ;;  %v42_v36 = vsub.f32 %v34_v31, %v38_v29 }
  0x14   :  { %v53_v26 = vsub.f32 %v45_v24, %v49_v19  ;;  %v63_v27 = vmul.f32 0.1, %v59_v20  ;;  %v64_v28 = vmul.f32 0.1, %v60_v21  ;;  %v50_v30 = vld [vmem:[#allocation2 + $0x18] sm:$0xf] }
  0x15   :  { %v54_v37 = vsub.f32 %v46_v32, %v50_v30 }
  0x16   :  { %v57_v33 = vmul.f32 2.0, %v53_v26  ;;  %v119_v34 = vrot.slane %v63_v27, 6  ;;  %v120_v35 = vrot.slane %v64_v28, 6  ;;  %67 = vst.msk [vmem:[#allocation2 + $0x2] sm:$0xff] %vm15_vm0, %v63_v27  ;;  %68 = vst.msk [vmem:[#allocation2 + $0xa] sm:$0xff] %vm15_vm0, %v64_v28 }
  0x17   :  { %v58_v40 = vmul.f32 2.0, %v54_v37 }
  0x18   :  { %v61_v38 = vadd.f32 %v57_v33, %v41_v25  ;;  %v121_v39 = vsel %vm118_vm1, %v119_v34, %v120_v35 }
  0x19   :  { %124 = vrot.lane.b32.xlu0 %v121_v39, %s200_s0  ;;  %v62_v42 = vadd.f32 %v58_v40, %v42_v36 }
  0x1a   :  { %v65_v41 = vmul.f32 0.1, %v61_v38 }
  0x1b   :  { %v66_v45 = vmul.f32 0.1, %v62_v42 }
  0x1c   :  { %69 = vst.msk [vmem:[#allocation2 + $0x12] sm:$0xff] %vm15_vm0, %v65_v41  ;;  %v122_v43 = vrot.slane %v65_v41, 6 }
  0x1d   :  { %v170_v44 = vld [vmem:[#allocation2 + $0x8] ss:$0 sm:$0xff]  ;;  %71 = vst.msk [vmem:[#allocation2 + $0x1a] sm:$0xf] %vm70_vm3, %v66_v45  ;;  %v101_v47 = vld [vmem:[#allocation2 + $0xa] sm:$0xff] }
  0x1e   :  { %81 = vst.msk [vmem:[#allocation2 + $0x2] sm:$0x3f] %vm80_vm2, %v170_v44  ;;  %v123_v46 = vsel %vm118_vm1, %v120_v35, %v122_v43 }
  0x1f   :  { %126 = vrot.lane.b32.xlu0 %v123_v46, %s200_s0 }
  0x23   :  { %v89_v48 = vld [vmem:[#allocation2 + $0xd] sm:$0xff]  ;;  %v171_v53 = vld [vmem:[#allocation2 + $0x17] ss:$0 sm:$0xff] }
  0x24   :  { %v92_v49 = vld [vmem:[#allocation2 + $0xb] sm:$0xff]  ;;  %87 = vst.msk [vmem:[#allocation2 + $0x18] sm:$0x3f] %vm80_vm2, %v171_v53 }
  0x25   :  { %v98_v50 = vld [vmem:[#allocation2 + $0xe] sm:$0xff]  ;;  %v95_v51 = vsub.f32 %v89_v48, %v92_v49  ;;  %v88_v54 = vld [vmem:[#allocation2 + $0x5] sm:$0xff] }
  0x26   :  { %v104_v52 = vsub.f32 %v98_v50, %v101_v47  ;;  %v91_v55 = vld [vmem:[#allocation2 + $0x3] sm:$0xff] }
  0x27   :  { %v97_v56 = vld [vmem:[#allocation2 + $0x6] sm:$0xff]  ;;  %v94_v59 = vsub.f32 %v88_v54, %v91_v55 }
  0x28   :  { %v100_v57 = vld [vmem:[#allocation2 + $0x2] sm:$0xff]  ;;  %v107_v58 = vmul.f32 2.0, %v104_v52 }
  0x29   :  { %v103_v60 = vsub.f32 %v97_v56, %v100_v57 }
  0x2a   :  { %v110_v61 = vadd.f32 %v107_v58, %v95_v51 }
  0x2b   :  { %v106_v62 = vmul.f32 2.0, %v103_v60  ;;  %v90_v3 = vld [vmem:[#allocation2 + $0x15] sm:$0xff] }
  0x2c   :  { %v113_v63 = vmul.f32 0.1, %v110_v61  ;;  %v93_v4 = vld [vmem:[#allocation2 + $0x13] sm:$0xff] }
  0x2d   :  { %v109_v2 = vadd.f32 %v106_v62, %v94_v59  ;;  %v99_v5 = vld [vmem:[#allocation2 + $0x16] sm:$0xff]  ;;  %v96_v9 = vsub.f32 %v90_v3, %v93_v4 }
  0x2e   :  { %v135_v7 = vrot.slane %v113_v63, 4  ;;  %v102_v8 = vld [vmem:[#allocation2 + $0x12] sm:$0xff] }
  0x2f   :  { %v112_v6 = vmul.f32 0.1, %v109_v2  ;;  %v105_v10 = vsub.f32 %v99_v5, %v102_v8 }
  0x31   :  { %v134_v11 = vrot.slane %v112_v6, 4  ;;  %v108_v12 = vmul.f32 2.0, %v105_v10 }
  0x33   :  { %v136_v13 = vsel %vm133_vm4, %v134_v11, %v135_v7  ;;  %v111_v14 = vadd.f32 %v108_v12, %v96_v9 }
  0x34   :  { %139 = vrot.lane.b32.xlu1 %v136_v13, %s201_s1 }
  0x35   :  { %v114_v15 = vmul.f32 0.1, %v111_v14 }
  0x37   :  { %v137_v16 = vrot.slane %v114_v15, 4 }
  0x39   :  { %v138_v17 = vsel %vm133_vm4, %v135_v7, %v137_v16 }
  0x3a   :  { %141 = vrot.lane.b32.xlu1 %v138_v17, %s201_s1 }
  0x8b   :  { %v125_v18 = vpop.permute.xlu0 %124 }
  0x8c   :  { %v145_v19 = vsel %vm15_vm0, %v222_v0, %v125_v18 }
  0x91   :  { %v127_v22 = vpop.permute.xlu0 %126 }
  0x92   :  { %v146_v23 = vsel %vm15_vm0, %v227_v1, %v127_v22 }
  0xa6   :  { %v140_v20 = vpop.permute.xlu1 %139 }
  0xa7   :  { %v148_v21 = vsel %vm147_vm5, %v145_v19, %v140_v20 }
  0xa8   :  { %151 = vst.msk [vmem:[#allocation3] sm:$0xff] %vm150_vm6, %v148_v21 }
  0xac   :  { %v142_v24 = vpop.permute.xlu1 %141 }
  0xad   :  { %v149_v25 = vsel %vm147_vm5, %v146_v23, %v142_v24 }
  0xae   :  { %152 = vst.msk [vmem:[#allocation3 + $0x8] sm:$0xff] %vm150_vm6, %v149_v25 }
  0xaf   :  { %187 = shalt.err (!%p184_p4)
}
  0xb0   :  { %s188_s22 = scalar_lea.hbm %s270_s2, 256 }
  0xb1   :  { %p189_p5 = scmp.ne.s32.totalorder %s270_s2, %s188_s22  ;;  %p192_p6 = scmp.lt.u32.totalorder %s188_s22, %s270_s2 }
  0xb3   :  { %p194_p7 = pnand %p192_p6, %p189_p5 }
  0xb5   :  { %197 = shalt.err (!%p194_p7)
}
  0xb6   :  { %s203_s27 = smov 128  }
  0xb7   :  { %164 = dma.vmem_to_hbm [thread:$0]  %s159_s18, 256, %s270_s2, [#allocation4], %s203_s27, %s203_s27, %s200_s0  }
  0xb8   :  { %198 = dma.done.wait [#allocation4], 256  }
  0xb9   :  { %199 = vsyncadd [#allocation4], 4294967040 }
  0xba   :  { %168 = vsyncpa [#allocation4], 1 }

</bundles_post_ra>
